<compile_context>
chip_gen: v6e
topology: v6e:2x2x1
jax: 0.10.0
libtpu: 0.0.40
codegen_flags: <defaults>
</compile_context>

<pallas_src>
import functools

import jax
import jax.numpy as jnp
import numpy as np
from jax import lax
from jax.experimental import pallas as pl
from jax.experimental.pallas import tpu as pltpu


def barbet_kernel(TB, S,
                  scal_ref,                      # (4,) SMEM: [a1, a2, aa, ba2]
                  x_ref,                         # (TB*S, D)   compute dtype
                  w1_ref, w2_ref, wa1_ref,       # dense weights, compute dtype
                  wc_ref,                        # (F2, TC)    compute dtype
                  bc_ref,                        # (1, TC)     f32
                  bias_ref,                      # (8, PADW)   f32 rows: b1,b2,ba1,wa2
                  out_ref):                      # (TB, TC)    f32
    cdt = w1_ref.dtype
    TM = TB * S
    F = w1_ref.shape[1]
    F2 = w2_ref.shape[1]
    A = wa1_ref.shape[1]

    a1 = scal_ref[0]
    a2 = scal_ref[1]
    aa = scal_ref[2]
    ba2 = scal_ref[3]

    xf = x_ref[...]                                                   # (TM, D)

    # sequential: LazyLinear -> PReLU  (f32 accumulate, f32 elementwise)
    h = jnp.dot(xf, w1_ref[...], preferred_element_type=jnp.float32)
    h = h + bias_ref[0:1, 0:F]
    h = jnp.where(h >= 0, h, h * a1)                                  # (TM, F)

    # intermediate layer: LazyLinear -> PReLU -> Dropout(p=0, eval) == identity
    g = jnp.dot(h.astype(cdt), w2_ref[...], preferred_element_type=jnp.float32)
    g = g + bias_ref[1:2, 0:F2]
    g = jnp.where(g >= 0, g, g * a2)                                  # (TM, F2)
    gc = g.astype(cdt)                                                # matmul operand

    # attention_layer: Linear -> PReLU -> Linear(A, 1)
    t = jnp.dot(gc, wa1_ref[...], preferred_element_type=jnp.float32)
    t = t + bias_ref[2:3, 0:A]
    t = jnp.where(t >= 0, t, t * aa)                                  # (TM, A)
    # final Linear(A -> 1) as a VPU multiply + lane reduction (no N=1 matmul);
    # only the tiny (TM, 1) score vector gets reshaped.
    s_col = jnp.sum(t * bias_ref[3:4, 0:A], axis=-1, keepdims=True) + ba2

    # softmax over the sequence axis (torch.softmax(..., dim=1)), lane-major
    scores = s_col.reshape(TB, S)
    m = jnp.max(scores, axis=-1, keepdims=True)
    e = jnp.exp(scores - m)
    wgt = e * pl.reciprocal(jnp.sum(e, axis=-1, keepdims=True), approx=False)

    # context_vector = sum(attention_weights * x, dim=1):
    # one masked (TB, TM) @ (TM, F2) MXU matmul against the 2-D activations
    # (avoids B separate M=1 matmuls and any reshape of the big tensor).
    rows_b = lax.broadcasted_iota(jnp.int32, (TB, TM), 0)
    cols = lax.broadcasted_iota(jnp.int32, (TB, TM), 1)
    wrep = jnp.concatenate([wgt] * TB, axis=-1)                       # (TB, TM)
    in_batch = (cols >= rows_b * S) & (cols < rows_b * S + S)
    sel = jnp.where(in_batch, wrep, 0.0)
    ctx = jnp.dot(sel.astype(cdt), gc, preferred_element_type=jnp.float32)

    # classifier (HierarchicalSoftmaxLazyLinear == plain linear -> raw logits)
    out_ref[...] = (jnp.dot(ctx.astype(cdt), wc_ref[...],
                            preferred_element_type=jnp.float32) + bc_ref[...])


def _round_up(v, m):
    return (v + m - 1) // m * m


def _batch_tile(B, S, target_rows=256):
    """Batch tile so rows/step ~= target_rows; multiple of 8 (or full B) for layout."""
    if B % 8 != 0:
        return B                       # single full-dim tile satisfies (8,128) rule
    tb = (target_rows // max(S, 1)) // 8 * 8
    tb = max(8, min(tb if tb > 0 else 8, B))
    while B % tb:
        tb -= 8
    return tb


def barbet_forward(x, p, *, compute_dtype=jnp.bfloat16, batch_tile=None,
                   class_tile=None):
    B, S, D = x.shape
    F = p["w1"].shape[1]
    F2 = p["w2"].shape[1]
    A = p["wa1"].shape[1]
    C = p["wc"].shape[1]

    TB = batch_tile if batch_tile is not None else _batch_tile(B, S)
    assert B % TB == 0 and (TB % 8 == 0 or TB == B)
    TM = TB * S

    # Lane-dense output: pad the class axis to a multiple of 128, slice after.
    CP = _round_up(C, 128)
    TC = class_tile if class_tile is not None else (256 if CP % 256 == 0 else 128)
    assert CP % TC == 0 and TC % 128 == 0

    cdt = compute_dtype
    x2 = x.astype(jnp.float32).reshape(B * S, D).astype(cdt)
    w1 = p["w1"].astype(cdt)
    w2 = p["w2"].astype(cdt)
    wa1 = p["wa1"].astype(cdt)
    wc = jnp.pad(p["wc"], ((0, 0), (0, CP - C))).astype(cdt)
    bc = jnp.pad(p["bc"], ((0, 0), (0, CP - C))).astype(jnp.float32)

    # Pack the small per-feature vectors into one f32 VMEM operand (fewer DMAs).
    PADW = _round_up(max(F, F2, A), 128)
    biases = jnp.zeros((8, PADW), jnp.float32)
    biases = biases.at[0, :F].set(p["b1"].reshape(-1).astype(jnp.float32))
    biases = biases.at[1, :F2].set(p["b2"].reshape(-1).astype(jnp.float32))
    biases = biases.at[2, :A].set(p["ba1"].reshape(-1).astype(jnp.float32))
    biases = biases.at[3, :A].set(p["wa2"].reshape(-1).astype(jnp.float32))

    # PReLU alphas + attention-score bias -> scalar prefetch (SMEM).
    scal = jnp.concatenate([p["a1"].reshape(-1), p["a2"].reshape(-1),
                            p["aa"].reshape(-1), p["ba2"].reshape(-1)]
                           ).astype(jnp.float32)

    nb = B // TB
    nc = CP // TC

    grid_spec = pltpu.PrefetchScalarGridSpec(
        num_scalar_prefetch=1,
        grid=(nb, nc),
        in_specs=[
            pl.BlockSpec((TM, D), lambda i, j, s: (i, 0)),     # x rows (pipelined)
            pl.BlockSpec((D, F), lambda i, j, s: (0, 0)),      # w1 (resident)
            pl.BlockSpec((F, F2), lambda i, j, s: (0, 0)),     # w2 (resident)
            pl.BlockSpec((F2, A), lambda i, j, s: (0, 0)),     # wa1 (resident)
            pl.BlockSpec((F2, TC), lambda i, j, s: (0, j)),    # classifier N-tile
            pl.BlockSpec((1, TC), lambda i, j, s: (0, j)),     # classifier bias tile
            pl.BlockSpec((8, PADW), lambda i, j, s: (0, 0)),   # packed biases
        ],
        out_specs=pl.BlockSpec((TB, TC), lambda i, j, s: (i, j)),
    )

    kernel = functools.partial(barbet_kernel, TB, S)
    out = pl.pallas_call(
        kernel,
        out_shape=jax.ShapeDtypeStruct((B, CP), jnp.float32),
        grid_spec=grid_spec,
        # Both axes independent -> megacore sharding on v7x; harmless on v5e/v6e.
        # VMEM usage here is tiny; set vmem_limit_bytes explicitly at production tiles.
        compiler_params=pltpu.CompilerParams(
            dimension_semantics=("parallel", "parallel")),
    )(scal, x2, w1, w2, wa1, wc, bc, biases)
    return out[:, :C]


def barbet_reference(x, p):
    """Pure-JAX reference mirroring the PyTorch forward (for validation)."""
    x = x.astype(jnp.float32)
    prelu = lambda v, a: jnp.where(v >= 0, v, v * a)
    h = prelu(x @ p["w1"] + p["b1"], p["a1"])
    h = prelu(h @ p["w2"] + p["b2"], p["a2"])
    t = prelu(h @ p["wa1"] + p["ba1"], p["aa"])
    scores = t @ p["wa2"] + p["ba2"]                 # (B, S, 1)
    w = jax.nn.softmax(scores, axis=1)
    ctx = jnp.sum(w * h, axis=1)                     # (B, F2)
    return ctx @ p["wc"] + p["bc"]                   # (B, C)


def init_params(key, d_in, features, growth_factor, attention_size, n_classes):
    f2 = int(features * growth_factor + 0.5)
    ks = jax.random.split(key, 8)

    def lin(k, fan_in, fan_out):
        kw, kb = jax.random.split(k)
        scale = 1.0 / np.sqrt(fan_in)
        w = jax.random.uniform(kw, (fan_in, fan_out), jnp.float32, -scale, scale)
        b = jax.random.uniform(kb, (1, fan_out), jnp.float32, -scale, scale)
        return w, b

    w1, b1 = lin(ks[0], d_in, features)
    w2, b2 = lin(ks[1], features, f2)
    wa1, ba1 = lin(ks[2], f2, attention_size)
    wa2, ba2 = lin(ks[3], attention_size, 1)
    wc, bc = lin(ks[4], f2, n_classes)
    prelu_init = jnp.full((1, 1), 0.25, jnp.float32)  # torch PReLU default
    return dict(w1=w1, b1=b1, a1=prelu_init,
                w2=w2, b2=b2, a2=prelu_init,
                wa1=wa1, ba1=ba1, aa=prelu_init,
                wa2=wa2, ba2=ba2,
                wc=wc, bc=bc)


if __name__ == "__main__":
    B, S, D_IN = 16, 8, 32         # batch, sequence, input features
    FEATURES = 32                  # first linear width
    GROWTH = 2.0                   # -> intermediate width 64
    ATTN = 32                      # attention_size
    N_CLASSES = 16                 # size of the hierarchical-softmax layer

    key = jax.random.PRNGKey(0)
    kx, kp = jax.random.split(key)
    x = jax.random.normal(kx, (B, S, D_IN), jnp.float32)
    params = init_params(kp, D_IN, FEATURES, GROWTH, ATTN, N_CLASSES)

    with jax.default_matmul_precision("highest"):
        ref = jax.block_until_ready(barbet_reference(x, params))

    # f32 compute path (tight check); batch_tile=8 -> 2 pipelined grid steps.
    out_f32 = jax.block_until_ready(
        barbet_forward(x, params, compute_dtype=jnp.float32, batch_tile=8))
    np.testing.assert_allclose(np.asarray(out_f32), np.asarray(ref),
                               rtol=1e-4, atol=1e-4)

    # bf16 matmul-operand path (the fast path on v5e/v6e/v7x); looser tolerance.
    out_bf16 = jax.block_until_ready(
        barbet_forward(x, params, compute_dtype=jnp.bfloat16, batch_tile=8))
    np.testing.assert_allclose(np.asarray(out_bf16), np.asarray(ref),
                               rtol=5e-2, atol=5e-2)

    assert out_f32.shape == (B, N_CLASSES)
    print("KERNEL_OK")
</pallas_src>

<mosaic_0001>
module attributes {stable_mosaic.version = 11 : i64} {
  func.func @barbet_kernel(%arg0: i32, %arg1: i32, %arg2: memref<4xf32, #tpu.memory_space<smem>>, %arg3: memref<64x32xf32, #tpu.memory_space<vmem>>, %arg4: memref<32x32xf32, #tpu.memory_space<vmem>>, %arg5: memref<32x64xf32, #tpu.memory_space<vmem>>, %arg6: memref<64x32xf32, #tpu.memory_space<vmem>>, %arg7: memref<64x128xf32, #tpu.memory_space<vmem>>, %arg8: memref<1x128xf32, #tpu.memory_space<vmem>>, %arg9: memref<8x128xf32, #tpu.memory_space<vmem>>, %arg10: memref<8x128xf32, #tpu.memory_space<vmem>>) attributes {dimension_semantics = [#tpu.dimension_semantics<parallel>, #tpu.dimension_semantics<parallel>], iteration_bounds = array<i64: 2, 1>, scalar_prefetch = 1 : i64, scratch_operands = 0 : i64, tpu.core_type = #tpu.core_type<tc>, window_params = [{transform_indices = @transform_0, window_bounds = array<i64: 64, 32>}, {pipeline_mode = #tpu.pipeline_mode<synchronous>, transform_indices = @transform_1, window_bounds = array<i64: 32, 32>}, {pipeline_mode = #tpu.pipeline_mode<synchronous>, transform_indices = @transform_2, window_bounds = array<i64: 32, 64>}, {pipeline_mode = #tpu.pipeline_mode<synchronous>, transform_indices = @transform_3, window_bounds = array<i64: 64, 32>}, {transform_indices = @transform_4, window_bounds = array<i64: 64, 128>}, {transform_indices = @transform_5, window_bounds = array<i64: 1, 128>}, {pipeline_mode = #tpu.pipeline_mode<synchronous>, transform_indices = @transform_6, window_bounds = array<i64: 8, 128>}, {transform_indices = @transform_7, window_bounds = array<i64: 8, 128>}]} {
    %c0 = arith.constant 0 : index
    %0 = memref.load %arg2[%c0] : memref<4xf32, #tpu.memory_space<smem>>
    %c1 = arith.constant 1 : index
    %1 = memref.load %arg2[%c1] : memref<4xf32, #tpu.memory_space<smem>>
    %c2 = arith.constant 2 : index
    %2 = memref.load %arg2[%c2] : memref<4xf32, #tpu.memory_space<smem>>
    %c3 = arith.constant 3 : index
    %3 = memref.load %arg2[%c3] : memref<4xf32, #tpu.memory_space<smem>>
    %c0_0 = arith.constant 0 : index
    %c0_1 = arith.constant 0 : index
    %4 = vector.load %arg3[%c0_0, %c0_1] : memref<64x32xf32, #tpu.memory_space<vmem>>, vector<64x32xf32>
    %c0_2 = arith.constant 0 : index
    %c0_3 = arith.constant 0 : index
    %5 = vector.load %arg4[%c0_2, %c0_3] : memref<32x32xf32, #tpu.memory_space<vmem>>, vector<32x32xf32>
    %cst = arith.constant dense<0.000000e+00> : vector<64x32xf32>
    %6 = tpu.matmul %4, %5, %cst {dimension_numbers = #tpu.dot_dimension_numbers<[1], [0], [0], [1], [0, 0, 1, 1], [], []>} : vector<64x32xf32>, vector<32x32xf32>, vector<64x32xf32> -> vector<64x32xf32>
    %c0_4 = arith.constant 0 : index
    %c0_5 = arith.constant 0 : index
    %7 = vector.load %arg9[%c0_4, %c0_5] : memref<8x128xf32, #tpu.memory_space<vmem>>, vector<1x32xf32>
    %8 = vector.broadcast %7 : vector<1x32xf32> to vector<64x32xf32>
    %9 = arith.addf %6, %8 : vector<64x32xf32>
    %cst_6 = arith.constant 0.000000e+00 : f32
    %10 = vector.broadcast %cst_6 : f32 to vector<64x32xf32>
    %11 = arith.cmpf oge, %9, %10 : vector<64x32xf32>
    %12 = vector.broadcast %0 : f32 to vector<64x32xf32>
    %13 = arith.mulf %9, %12 : vector<64x32xf32>
    %14 = arith.select %11, %9, %13 : vector<64x32xi1>, vector<64x32xf32>
    %c0_7 = arith.constant 0 : index
    %c0_8 = arith.constant 0 : index
    %15 = vector.load %arg5[%c0_7, %c0_8] : memref<32x64xf32, #tpu.memory_space<vmem>>, vector<32x64xf32>
    %cst_9 = arith.constant dense<0.000000e+00> : vector<64x64xf32>
    %16 = tpu.matmul %14, %15, %cst_9 {dimension_numbers = #tpu.dot_dimension_numbers<[1], [0], [0], [1], [0, 0, 1, 1], [], []>} : vector<64x32xf32>, vector<32x64xf32>, vector<64x64xf32> -> vector<64x64xf32>
    %c1_10 = arith.constant 1 : index
    %c0_11 = arith.constant 0 : index
    %17 = vector.load %arg9[%c1_10, %c0_11] : memref<8x128xf32, #tpu.memory_space<vmem>>, vector<1x64xf32>
    %18 = vector.broadcast %17 : vector<1x64xf32> to vector<64x64xf32>
    %19 = arith.addf %16, %18 : vector<64x64xf32>
    %cst_12 = arith.constant 0.000000e+00 : f32
    %20 = vector.broadcast %cst_12 : f32 to vector<64x64xf32>
    %21 = arith.cmpf oge, %19, %20 : vector<64x64xf32>
    %22 = vector.broadcast %1 : f32 to vector<64x64xf32>
    %23 = arith.mulf %19, %22 : vector<64x64xf32>
    %24 = arith.select %21, %19, %23 : vector<64x64xi1>, vector<64x64xf32>
    %c0_13 = arith.constant 0 : index
    %c0_14 = arith.constant 0 : index
    %25 = vector.load %arg6[%c0_13, %c0_14] : memref<64x32xf32, #tpu.memory_space<vmem>>, vector<64x32xf32>
    %cst_15 = arith.constant dense<0.000000e+00> : vector<64x32xf32>
    %26 = tpu.matmul %24, %25, %cst_15 {dimension_numbers = #tpu.dot_dimension_numbers<[1], [0], [0], [1], [0, 0, 1, 1], [], []>} : vector<64x64xf32>, vector<64x32xf32>, vector<64x32xf32> -> vector<64x32xf32>
    %c2_16 = arith.constant 2 : index
    %c0_17 = arith.constant 0 : index
    %27 = vector.load %arg9[%c2_16, %c0_17] : memref<8x128xf32, #tpu.memory_space<vmem>>, vector<1x32xf32>
    %28 = vector.broadcast %27 : vector<1x32xf32> to vector<64x32xf32>
    %29 = arith.addf %26, %28 : vector<64x32xf32>
    %cst_18 = arith.constant 0.000000e+00 : f32
    %30 = vector.broadcast %cst_18 : f32 to vector<64x32xf32>
    %31 = arith.cmpf oge, %29, %30 : vector<64x32xf32>
    %32 = vector.broadcast %2 : f32 to vector<64x32xf32>
    %33 = arith.mulf %29, %32 : vector<64x32xf32>
    %34 = arith.select %31, %29, %33 : vector<64x32xi1>, vector<64x32xf32>
    %c3_19 = arith.constant 3 : index
    %c0_20 = arith.constant 0 : index
    %35 = vector.load %arg9[%c3_19, %c0_20] : memref<8x128xf32, #tpu.memory_space<vmem>>, vector<1x32xf32>
    %36 = vector.broadcast %35 : vector<1x32xf32> to vector<64x32xf32>
    %37 = arith.mulf %34, %36 : vector<64x32xf32>
    %cst_21 = arith.constant dense<0.000000e+00> : vector<64xf32>
    %38 = vector.multi_reduction <add>, %37, %cst_21 [1] : vector<64x32xf32> to vector<64xf32>
    %39 = vector.shape_cast %38 : vector<64xf32> to vector<64x1xf32>
    %40 = vector.broadcast %3 : f32 to vector<64x1xf32>
    %41 = arith.addf %39, %40 : vector<64x1xf32>
    %42 = vector.shape_cast %41 : vector<64x1xf32> to vector<8x8xf32>
    %cst_22 = arith.constant dense<0xFF800000> : vector<8xf32>
    %43 = vector.multi_reduction <maximumf>, %42, %cst_22 [1] : vector<8x8xf32> to vector<8xf32>
    %44 = vector.shape_cast %43 : vector<8xf32> to vector<8x1xf32>
    %45 = vector.broadcast %44 : vector<8x1xf32> to vector<8x8xf32>
    %46 = arith.subf %42, %45 : vector<8x8xf32>
    %47 = math.exp %46 : vector<8x8xf32>
    %cst_23 = arith.constant dense<0.000000e+00> : vector<8xf32>
    %48 = vector.multi_reduction <add>, %47, %cst_23 [1] : vector<8x8xf32> to vector<8xf32>
    %49 = vector.shape_cast %48 : vector<8xf32> to vector<8x1xf32>
    %50 = tpu.reciprocal %49 : vector<8x1xf32> -> vector<8x1xf32>
    %51 = vector.broadcast %50 : vector<8x1xf32> to vector<8x8xf32>
    %52 = arith.mulf %47, %51 : vector<8x8xf32>
    %53 = tpu.iota {dimensions = array<i32: 0>} : vector<8x64xi32>
    %54 = tpu.iota {dimensions = array<i32: 1>} : vector<8x64xi32>
    %55 = tpu.concatenate %52, %52, %52, %52, %52, %52, %52, %52 in 1 : vector<8x8xf32>, vector<8x8xf32>, vector<8x8xf32>, vector<8x8xf32>, vector<8x8xf32>, vector<8x8xf32>, vector<8x8xf32>, vector<8x8xf32> -> vector<8x64xf32>
    %c8_i32 = arith.constant 8 : i32
    %56 = vector.broadcast %c8_i32 : i32 to vector<8x64xi32>
    %57 = arith.muli %53, %56 : vector<8x64xi32>
    %58 = arith.cmpi sge, %54, %57 : vector<8x64xi32>
    %c8_i32_24 = arith.constant 8 : i32
    %59 = vector.broadcast %c8_i32_24 : i32 to vector<8x64xi32>
    %60 = arith.muli %53, %59 : vector<8x64xi32>
    %c8_i32_25 = arith.constant 8 : i32
    %61 = vector.broadcast %c8_i32_25 : i32 to vector<8x64xi32>
    %62 = arith.addi %60, %61 : vector<8x64xi32>
    %63 = arith.cmpi slt, %54, %62 : vector<8x64xi32>
    %64 = arith.andi %58, %63 : vector<8x64xi1>
    %cst_26 = arith.constant 0.000000e+00 : f32
    %65 = vector.broadcast %cst_26 : f32 to vector<8x64xf32>
    %66 = arith.select %64, %55, %65 : vector<8x64xi1>, vector<8x64xf32>
    %cst_27 = arith.constant dense<0.000000e+00> : vector<8x64xf32>
    %67 = tpu.matmul %66, %24, %cst_27 {dimension_numbers = #tpu.dot_dimension_numbers<[1], [0], [0], [1], [0, 0, 1, 1], [], []>} : vector<8x64xf32>, vector<64x64xf32>, vector<8x64xf32> -> vector<8x64xf32>
    %c0_28 = arith.constant 0 : index
    %c0_29 = arith.constant 0 : index
    %68 = vector.load %arg7[%c0_28, %c0_29] : memref<64x128xf32, #tpu.memory_space<vmem>>, vector<64x128xf32>
    %cst_30 = arith.constant dense<0.000000e+00> : vector<8x128xf32>
    %69 = tpu.matmul %67, %68, %cst_30 {dimension_numbers = #tpu.dot_dimension_numbers<[1], [0], [0], [1], [0, 0, 1, 1], [], []>} : vector<8x64xf32>, vector<64x128xf32>, vector<8x128xf32> -> vector<8x128xf32>
    %c0_31 = arith.constant 0 : index
    %c0_32 = arith.constant 0 : index
    %70 = vector.load %arg8[%c0_31, %c0_32] : memref<1x128xf32, #tpu.memory_space<vmem>>, vector<1x128xf32>
    %71 = vector.broadcast %70 : vector<1x128xf32> to vector<8x128xf32>
    %72 = arith.addf %69, %71 : vector<8x128xf32>
    %c0_33 = arith.constant 0 : index
    %c0_34 = arith.constant 0 : index
    %73 = vector.load %arg10[%c0_33, %c0_34] : memref<8x128xf32, #tpu.memory_space<vmem>>, vector<8x128xf32>
    tpu.vector_store %arg10[%c0_33, %c0_34], %72 {strides = array<i32>} : memref<8x128xf32, #tpu.memory_space<vmem>>, vector<8x128xf32>,
    return
  }
  func.func @transform_0(%arg0: i32, %arg1: i32, %arg2: memref<4xf32, #tpu.memory_space<smem>>) -> (i32, i32) {
    %c0_i32 = arith.constant 0 : i32
    %c0_i32_0 = arith.constant 0 : i32
    return %arg0, %c0_i32 : i32, i32
  }
  func.func @transform_1(%arg0: i32, %arg1: i32, %arg2: memref<4xf32, #tpu.memory_space<smem>>) -> (i32, i32) {
    %c0_i32 = arith.constant 0 : i32
    %c0_i32_0 = arith.constant 0 : i32
    %c0_i32_1 = arith.constant 0 : i32
    return %c0_i32, %c0_i32_0 : i32, i32
  }
  func.func @transform_2(%arg0: i32, %arg1: i32, %arg2: memref<4xf32, #tpu.memory_space<smem>>) -> (i32, i32) {
    %c0_i32 = arith.constant 0 : i32
    %c0_i32_0 = arith.constant 0 : i32
    %c0_i32_1 = arith.constant 0 : i32
    return %c0_i32, %c0_i32_0 : i32, i32
  }
  func.func @transform_3(%arg0: i32, %arg1: i32, %arg2: memref<4xf32, #tpu.memory_space<smem>>) -> (i32, i32) {
    %c0_i32 = arith.constant 0 : i32
    %c0_i32_0 = arith.constant 0 : i32
    %c0_i32_1 = arith.constant 0 : i32
    return %c0_i32, %c0_i32_0 : i32, i32
  }
  func.func @transform_4(%arg0: i32, %arg1: i32, %arg2: memref<4xf32, #tpu.memory_space<smem>>) -> (i32, i32) {
    %c0_i32 = arith.constant 0 : i32
    %c0_i32_0 = arith.constant 0 : i32
    return %c0_i32, %arg1 : i32, i32
  }
  func.func @transform_5(%arg0: i32, %arg1: i32, %arg2: memref<4xf32, #tpu.memory_space<smem>>) -> (i32, i32) {
    %c0_i32 = arith.constant 0 : i32
    %c0_i32_0 = arith.constant 0 : i32
    return %c0_i32, %arg1 : i32, i32
  }
  func.func @transform_6(%arg0: i32, %arg1: i32, %arg2: memref<4xf32, #tpu.memory_space<smem>>) -> (i32, i32) {
    %c0_i32 = arith.constant 0 : i32
    %c0_i32_0 = arith.constant 0 : i32
    %c0_i32_1 = arith.constant 0 : i32
    return %c0_i32, %c0_i32_0 : i32, i32
  }
  func.func @transform_7(%arg0: i32, %arg1: i32, %arg2: memref<4xf32, #tpu.memory_space<smem>>) -> (i32, i32) {
    %c0_i32 = arith.constant 0 : i32
    return %arg0, %arg1 : i32, i32
  }
}

</mosaic_0001>

<bundles_post_ra>
// kernel: tpu_custom_call.1
= control target key start
LH: loop header
LB: loop body
LE: loop exit
PB: predicated region body
PF: predicated region fallthrough
CT: control target
= control target key end

     0   :  { %s2733_s0 = inlined_call_operand.vmem [shape: f32[4], index: 0, kind: input, shape index: {}]   ;;  %s2734_s1 = inlined_call_operand.vmem [shape: f32[128,32], index: 1, kind: input, shape index: {}]   ;;  %s2735_s2 = inlined_call_operand.vmem [shape: f32[32,32], index: 2, kind: input, shape index: {}]   ;;  %s2736_s3 = inlined_call_operand.vmem [shape: f32[32,64], index: 3, kind: input, shape index: {}]   ;;  %s2737_s4 = inlined_call_operand.vmem [shape: f32[64,32], index: 4, kind: input, shape index: {}]   ;;  %s2738_s5 = inlined_call_operand.vmem [shape: f32[64,128], index: 5, kind: input, shape index: {}]   ;;  %s2739_s6 = inlined_call_operand.vmem [shape: f32[1,128], index: 6, kind: input, shape index: {}]   ;;  %s2740_s7 = inlined_call_operand.vmem [shape: f32[8,128], index: 7, kind: input, shape index: {}]   ;;  %s2741_s8 = inlined_call_operand.hbm [shape: f32[16,128], index: 8, kind: output, shape index: {}]  }
   0x1   :  { %s13_s29 = sshll.u32 %s2733_s0, 4  ;;  %s14_s29 = int_to_ptr.vmem [resolvable:$true] %s13_s29 }
   0x2   :  { %s2077_s30 = scalar_lea.vmem %s14_s29, 16  ;;  %p2082_p1 = scmp.lt.s32.totalorder %s14_s29, %s14_s29 }
   0x3   :  { %p2078_p0 = scmp.ne.s32.totalorder %s14_s29, %s2077_s30  ;;  %p2083_p2 = scmp.lt.s32.totalorder %s2077_s30, %s2077_s30 }
   0x5   :  { %p2084_p3 = por %p2083_p2, %p2082_p1 }
   0x7   :  { %p2085_p4 = pnand %p2084_p3, %p2078_p0 }
   0x9   :  { %2088 = shalt.err (!%p2085_p4)  }
   0xa   :  { %s2169_s9 = smov [#allocation3]  }
   0xb   :  { %16 = dma.vmem_to_smem %s14_s29, 16, %s2169_s9, [#allocation2] }
   0xc   :  { %2139 = dma.done.wait [#allocation2], 16 }
   0xd   :  { %2140 = vsyncadd [#allocation2], 4294967280 }
   0xe   :  { %18 = sfence }
   0xf   :  { %19 = vsyncpa [#allocation5], 0 }
  0x10   :  { %21 = vsyncpa [#allocation5 + $0x1], 0  ;;  %s2222_s10 = smov 0   ;;  %s2224_s11 = smov 0  }
  0x11   :  { %s2226_s0 = smov 0   ;;  %s2228_s12 = smov 0  }
  0x12   :  { %s2230_s13 = smov 0   ;;  %s2232_s14 = smov 0  }
  0x13 LB: > { %s1786_s15 = sadd.s32 4294967295, %s2167_s14   ;;  %s1787_s16 = sadd.s32 4294967294, %s2167_s14   ;;  %s2167_s14 = sphi %s2232_s14, %s27_s14   ;;  %s2163_s13 = sphi %s2230_s13, %s2750_s13   ;;  %s2159_s12 = sphi %s2228_s12, %s2749_s12   ;;  %s2155_s0 = sphi %s2226_s0, %s2748_s0   ;;  %s2151_s11 = sphi %s2224_s11, %s2747_s11   ;;  %s2147_s10 = sphi %s2222_s10, %s2746_s10  }
  0x14   : > { %s39_s17 = sadd.s32 1, %s2163_s13  ;;  %s210_s18 = sadd.s32 1, %s2155_s0 }
  0x15   : > { %p41_p5 = scmp.ge.s32.totalorder %s39_s17, 2  ;;  %p220_p6 = scmp.ne.s32.totalorder %s2155_s0, %s2151_s11 }
  0x16   : > { %p221_p7 = scmp.eq.s32.totalorder %s1786_s15, 1  ;;  %p226_p8 = scmp.ne.s32.totalorder %s2151_s11, %s2147_s10 }
  0x17   : > { %s2752_s17 = smov (%p41_p5, %s39_s17), 0  ;;  %p227_p10 = scmp.eq.s32.totalorder %s1787_s16, 1 }
  0x18   : > { %p2262_p9 = por %p221_p7, %p220_p6  ;;  %s205_s20 = ssub.s32 %s2163_s13, %s2752_s17 }
  0x19   : > { %p1792_p11 = scmp.ge.s32.totalorder %s2167_s14, 1  ;;  %p208_p12 = scmp.eq.s32.totalorder %s205_s20, 0 }
  0x1a   : > { %p2269_p13 = por %p227_p10, %p226_p8  ;;  %p279_p0 = scmp.lt.s32.totalorder %s2167_s14, 3 }
  0x1b   : > { %s2275_s22 = scalar_select %p208_p12, %s2155_s0, %s210_s18  }
  0x1c   : > { %p280_p1 = pnand %p1792_p11, %p279_p0 }
  0x1d   : > { %s1794_s27 = sshll.u32 (!%p280_p1), %s2159_s12, 3  ;;  %s331_s26 = sld [smem:[#allocation3]] (!%p280_p1) }
  0x1e   : > { %283 = sbr.rel (%p280_p1) target bundleno = 1837 (0x72d), region = 48  ;;  %p319_p2 = scmp.lt.s32.totalorder (!%p280_p1), %s1794_s27, 15 }
  0x1f   : > { %s1796_s24 = sld [smem:[#allocation3 + $0x1]] (!%p280_p1)  ;;  %s315_s23 = sand.u32 (!%p280_p1), 1, %s2151_s11  }
  0x20   : > { %s1677_s16 = scalar_lea.sflag (!%p280_p1), [#allocation5], %s315_s23 }
  0x23   : > { %v346_v0 = vld [vmem:[%s2735_s2 + $0x18] sm:$0xff]  ;;  %v345_v1 = vld [vmem:[%s2735_s2 + $0x10] sm:$0xff]  ;;  %v344_v2 = vld [vmem:[%s2735_s2 + $0x8] sm:$0xff]  ;;  %s2754_s27 = smov (!%p319_p2, %s1794_s27), 15  ;;  %vm352_vm0 = vcmask 261120   ;;  %v490_v23 = vstv %s331_s26  ;;  %v2170_v58 = vmov 0.0  }
  0x24   : > { %1892 = vmatprep.subr.mxu0 %v346_v0  ;;  %v343_v3 = vld [vmem:[%s2735_s2] sm:$0xff]  ;;  %s1795_s15 = sshll.u32 %s2754_s27, 3  ;;  %v510_v12 = vld [vmem:[%s2736_s3 + $0x18] sm:$0xff]  ;;  %v509_v13 = vld [vmem:[%s2736_s3 + $0x10] sm:$0xff]  ;;  %vm683_vm9 = vcmask 523264   ;;  %s1797_s27 = sld [smem:[#allocation3 + $0x2]] }
  0x25   : > { %1893 = vmatpush3.msra.mxu0 %v346_v0  ;;  %s322_s20 = scalar_lea.vmem %s2734_s1, %s1795_s15  ;;  %1912 = vmatprep.subr.mxu1 %v510_v12  ;;  %v508_v14 = vld [vmem:[%s2736_s3 + $0x8] sm:$0xff]  ;;  %v507_v15 = vld [vmem:[%s2736_s3] sm:$0xff]  ;;  %v677_v16 = vld [vmem:[%s2737_s4 + $0x38] sm:$0xff]  ;;  %v653_v62 = vstv %s1796_s24  ;;  %s1798_s15 = sld [smem:[#allocation3 + $0x3]] }
  0x26   : > { %1894 = vmatprep.subr.mxu0 %v345_v1  ;;  %v335_v4 = vld [vmem:[%s322_s20] sm:$0xff]  ;;  %v336_v5 = vld [vmem:[%s322_s20 + $0x8] sm:$0xff]  ;;  %v337_v6 = vld [vmem:[%s322_s20 + $0x10] sm:$0xff]  ;;  %1913 = vmatpush3.msra.mxu1 %v510_v12  ;;  %s1793_s24 = sshll.u32 %s315_s23, 3 }
  0x27   : > { %1895 = vmatpush3.msra.mxu0 %v345_v1  ;;  %1900 = vmatprep.mubr.msk.f32.mxu0 %vm352_vm0, %v335_v4  ;;  %v338_v7 = vld [vmem:[%s322_s20 + $0x18] sm:$0xff]  ;;  %v339_v8 = vld [vmem:[%s322_s20 + $0x20] sm:$0xff]  ;;  %v340_v9 = vld [vmem:[%s322_s20 + $0x28] sm:$0xff]  ;;  %s317_s28 = scalar_lea.vmem [#allocation4], %s1793_s24 }
  0x28   : > { %1896 = vmatprep.subr.mxu0 %v344_v2  ;;  %v341_v10 = vld [vmem:[%s322_s20 + $0x30] sm:$0xff]  ;;  %v342_v11 = vld [vmem:[%s322_s20 + $0x38] sm:$0xff]  ;;  %1914 = vmatprep.subr.mxu1 %v509_v13  ;;  %v675_v18 = vld [vmem:[%s2737_s4 + $0x28] sm:$0xff]  ;;  %s1691_s29 = sshll.u32 %s317_s28, 4  ;;  %s2173_s20 = smov [#allocation4]   ;;  %s1692_s29 = int_to_ptr.vmem [resolvable:$true] %s1691_s29 }
  0x29   : > { %1897 = vmatpush3.msra.mxu0 %v344_v2  ;;  %1915 = vmatpush3.msra.mxu1 %v509_v13  ;;  %v676_v17 = vld [vmem:[%s2737_s4 + $0x30] sm:$0xff]  ;;  %v674_v19 = vld [vmem:[%s2737_s4 + $0x20] sm:$0xff]  ;;  %v673_v54 = vld [vmem:[%s2737_s4 + $0x18] sm:$0xff]  ;;  %s2089_s18 = scalar_lea.vmem %s1692_s29, 128 }
  0x2a   : > { %1898 = vmatprep.subr.mxu0 %v343_v3  ;;  %1916 = vmatprep.subr.mxu1 %v508_v14  ;;  %v1799_v20 = vld [vmem:[%s2740_s7] ss:$0 sm:$0xff]  ;;  %v672_v55 = vld [vmem:[%s2737_s4 + $0x10] sm:$0xff]  ;;  %v671_v56 = vld [vmem:[%s2737_s4 + $0x8] sm:$0xff]  ;;  %p2090_p3 = scmp.ne.s32.totalorder %s1692_s29, %s2089_s18 }
  0x2b   : > { %1899 = vmatpush3.msra.mxu0 %v343_v3  ;;  %1917 = vmatpush3.msra.mxu1 %v508_v14  ;;  %v670_v57 = vld [vmem:[%s2737_s4] sm:$0xff] }
  0x2c   : > { %1901 = vmatmul.mubr.msk.f32.vlgmr.msra.gmra.mxu0 %vm352_vm0, %v336_v5  ;;  %1918 = vmatprep.subr.mxu1 %v507_v15  ;;  %v1808_v59 = vld [vmem:[%s2740_s7 + $0x1] ss:$0 sm:$0xff]  ;;  %p2091_p4 = pnand %p2090_p3, %p2262_p9 }
  0x2d   : > { %1903 = vmatprep.mubr.msk.f32.mxu0 %vm352_vm0, %v337_v6  ;;  %1919 = vmatpush3.msra.mxu1 %v507_v15 }
  0x2e   : > { %1932 = vmatprep.subr.mxu0 %v677_v16  ;;  %1960 = vmatprep.subr.mxu1 %v2170_v58  ;;  %p2092_p5 = pneg %p2091_p4 }
  0x2f   : > { %1933 = vmatpush3.msra.mxu0 %v677_v16 }
  0x30   : > { %1904 = vmatmul.mubr.msk.f32.gmra.mxu0 %vm352_vm0, %v338_v7  ;;  %1934 = vmatprep.subr.mxu0 %v676_v17 }
  0x31   : > { %1906 = vmatprep.mubr.msk.f32.mxu0 %vm352_vm0, %v339_v8  ;;  %1935 = vmatpush3.msra.mxu0 %v676_v17 }
  0x32   : > { %1936 = vmatprep.subr.mxu0 %v675_v18 }
  0x33   : > { %1937 = vmatpush3.msra.mxu0 %v675_v18 }
  0x34   : > { %1907 = vmatmul.mubr.msk.f32.gmra.mxu0 %vm352_vm0, %v340_v9  ;;  %1938 = vmatprep.subr.mxu0 %v674_v19 }
  0x35   : > { %1909 = vmatprep.mubr.msk.f32.mxu0 %vm352_vm0, %v341_v10  ;;  %1939 = vmatpush3.msra.mxu0 %v674_v19 }
  0x36   : > { %1940 = vmatprep.subr.mxu0 %v673_v54 }
  0x37   : > { %1941 = vmatpush3.msra.mxu0 %v673_v54 }
  0x38   : > { %1910 = vmatmul.mubr.msk.f32.gmra.mxu0 %vm352_vm0, %v342_v11  ;;  %1942 = vmatprep.subr.mxu0 %v672_v55 }
  0x39   : > { %1943 = vmatpush3.msra.mxu0 %v672_v55 }
  0x3a   : > { %1944 = vmatprep.subr.mxu0 %v671_v56 }
  0x3b   : > { %1945 = vmatpush3.msra.mxu0 %v671_v56 }
  0x3c   : > { %1946 = vmatprep.subr.mxu0 %v670_v57 }
  0x3d   : > { %1947 = vmatpush3.msra.mxu0 %v670_v57 }
  0x3e   : > { %1979 = vmatprep.subr.mxu0 %v2170_v58 }
  0xec   : > { %v1902_v21 = vpop.f32.mrf.mxu0 }
  0xed   : > { %v449_v22 = vadd.f32 %v1902_v21, %v1799_v20 }
  0xee   : > { %v443_v24 = vpop.f32.mrf.mxu0 }
  0xef   : > { %v444_v25 = vadd.f32 %v1799_v20, %v443_v24  ;;  %v492_v26 = vmul.f32 %v490_v23, %v449_v22  ;;  %vm483_vm1 = vcmp.ge.f32.partialorder %v449_v22, 0.0 }
  0xf0   : > { %v1905_v27 = vpop.f32.mrf.mxu0 }
  0xf1   : > { %v459_v28 = vadd.f32 %v1905_v27, %v1799_v20  ;;  %vm482_vm2 = vcmp.ge.f32.partialorder %v444_v25, 0.0  ;;  %v491_v29 = vmul.f32 %v490_v23, %v444_v25  ;;  %v500_v35 = vsel %vm483_vm1, %v449_v22, %v492_v26 }
  0xf2   : > { %v453_v30 = vpop.f32.mrf.mxu0 }
  0xf3   : > { %v454_v31 = vadd.f32 %v1799_v20, %v453_v30  ;;  %v499_v32 = vsel %vm482_vm2, %v444_v25, %v491_v29  ;;  %v494_v33 = vmul.f32 %v490_v23, %v459_v28  ;;  %vm485_vm3 = vcmp.ge.f32.partialorder %v459_v28, 0.0  ;;  %v1817_v29 = vld [vmem:[%s2740_s7 + $0x2] ss:$0 sm:$0xff] }
  0xf4   : > { %v1908_v34 = vpop.f32.mrf.mxu0  ;;  %1920 = vmatprep.mubr.msk.f32.mxu1 %vm352_vm0, %v499_v32 }
  0xf5   : > { %vm484_vm4 = vcmp.ge.f32.partialorder %v454_v31, 0.0  ;;  %v493_v36 = vmul.f32 %v490_v23, %v454_v31  ;;  %v469_v37 = vadd.f32 %v1908_v34, %v1799_v20  ;;  %1921 = vmatmul.mubr.msk.f32.vlgmr.msra.gmra.mxu1 %vm352_vm0, %v500_v35  ;;  %v502_v43 = vsel %vm485_vm3, %v459_v28, %v494_v33 }
  0xf6   : > { %v463_v38 = vpop.f32.mrf.mxu0 }
  0xf7   : > { %v464_v39 = vadd.f32 %v1799_v20, %v463_v38  ;;  %v501_v40 = vsel %vm484_vm4, %v454_v31, %v493_v36  ;;  %v496_v41 = vmul.f32 %v490_v23, %v469_v37  ;;  %vm487_vm5 = vcmp.ge.f32.partialorder %v469_v37, 0.0  ;;  %v1826_v36 = vld [vmem:[%s2740_s7 + $0x3] ss:$0 sm:$0xff] }
  0xf8   : > { %v1911_v42 = vpop.f32.mrf.mxu0  ;;  %1923 = vmatprep.mubr.msk.f32.mxu1 %vm352_vm0, %v501_v40  ;;  %v821_v31 = vstv %s1797_s27  ;;  %s1831_s27 = sshll.u32 %s2159_s12, 7  ;;  %s2093_s12 = sshll.u32 %s2173_s20, 4  ;;  %s2094_s12 = int_to_ptr.vmem [resolvable:$false] %s2093_s12 }
  0xf9   : > { %vm486_vm6 = vcmp.ge.f32.partialorder %v464_v39, 0.0  ;;  %v495_v44 = vmul.f32 %v490_v23, %v464_v39  ;;  %v479_v45 = vadd.f32 %v1911_v42, %v1799_v20  ;;  %1924 = vmatmul.mubr.msk.f32.gmra.mxu1 %vm352_vm0, %v502_v43  ;;  %v504_v50 = vsel %vm487_vm5, %v469_v37, %v496_v41  ;;  %s2095_s24 = scalar_lea.vmem %s2094_s12, 256  ;;  %p2096_p6 = scmp.lt.s32.totalorder %s1692_s29, %s2094_s12 }
  0xfa   : > { %v473_v46 = vpop.f32.mrf.mxu0  ;;  %p2097_p7 = scmp.lt.s32.totalorder %s2095_s24, %s2089_s18 }
  0xfb   : > { %v474_v47 = vadd.f32 %v1799_v20, %v473_v46  ;;  %v503_v48 = vsel %vm486_vm6, %v464_v39, %v495_v44  ;;  %v498_v49 = vmul.f32 %v490_v23, %v479_v45  ;;  %vm489_vm7 = vcmp.ge.f32.partialorder %v479_v45, 0.0 }
  0xfc   : > { %1926 = vmatprep.mubr.msk.f32.mxu1 %vm352_vm0, %v503_v48  ;;  %p2098_p8 = por %p2097_p7, %p2096_p6 }
  0xfd   : > { %vm488_vm8 = vcmp.ge.f32.partialorder %v474_v47, 0.0  ;;  %v497_v51 = vmul.f32 %v490_v23, %v474_v47  ;;  %1927 = vmatmul.mubr.msk.f32.gmra.mxu1 %vm352_vm0, %v504_v50  ;;  %v506_v53 = vsel %vm489_vm7, %v479_v45, %v498_v49 }
  0xfe   : > { %p2099_p10 = pnand %p2098_p8, %p2092_p5 }
  0xff   : > { %v505_v52 = vsel %vm488_vm8, %v474_v47, %v497_v51 }
 0x100   : > { %1929 = vmatprep.mubr.msk.f32.mxu1 %vm352_vm0, %v505_v52 }
 0x101   : > { %1930 = vmatmul.mubr.msk.f32.gmra.mxu1 %vm352_vm0, %v506_v53 }
 0x1b5   : > { %v1922_v60 = vpop.f32.mrf.mxu1 }
 0x1b6   : > { %v612_v61 = vadd.f32 %v1922_v60, %v1808_v59 }
 0x1b7   : > { %v606_v63 = vpop.f32.mrf.mxu1 }
 0x1b8   : > { %v607_v0 = vadd.f32 %v1808_v59, %v606_v63  ;;  %v655_v1 = vmul.f32 %v653_v62, %v612_v61  ;;  %vm646_vm10 = vcmp.ge.f32.partialorder %v612_v61, 0.0 }
 0x1b9   : > { %v1925_v2 = vpop.f32.mrf.mxu1 }
 0x1ba   : > { %vm645_vm11 = vcmp.ge.f32.partialorder %v607_v0, 0.0  ;;  %v654_v3 = vmul.f32 %v653_v62, %v607_v0  ;;  %v622_v4 = vadd.f32 %v1925_v2, %v1808_v59  ;;  %v663_v8 = vsel %vm646_vm10, %v612_v61, %v655_v1 }
 0x1bb   : > { %v616_v5 = vpop.f32.mrf.mxu1 }
 0x1bc   : > { %v617_v6 = vadd.f32 %v1808_v59, %v616_v5  ;;  %v662_v7 = vsel %vm645_vm11, %v607_v0, %v654_v3  ;;  %v657_v9 = vmul.f32 %v653_v62, %v622_v4  ;;  %vm648_vm12 = vcmp.ge.f32.partialorder %v622_v4, 0.0 }
 0x1bd   : > { %v1928_v10 = vpop.f32.mrf.mxu1  ;;  %1948 = vmatprep.mubr.msk.f32.mxu0 %vm683_vm9, %v662_v7 }
 0x1be   : > { %vm647_vm13 = vcmp.ge.f32.partialorder %v617_v6, 0.0  ;;  %v656_v11 = vmul.f32 %v653_v62, %v617_v6  ;;  %v632_v12 = vadd.f32 %v1928_v10, %v1808_v59  ;;  %1949 = vmatmul.mubr.msk.f32.vlgmr.msra.gmra.mxu0 %vm683_vm9, %v663_v8  ;;  %v665_v18 = vsel %vm648_vm12, %v622_v4, %v657_v9 }
 0x1bf   : > { %v626_v13 = vpop.f32.mrf.mxu1  ;;  %vm926_vm12 = vcmask 1041409  }
 0x1c0   : > { %v627_v14 = vadd.f32 %v1808_v59, %v626_v13  ;;  %v664_v15 = vsel %vm647_vm13, %v617_v6, %v656_v11  ;;  %v659_v16 = vmul.f32 %v653_v62, %v632_v12  ;;  %vm650_vm14 = vcmp.ge.f32.partialorder %v632_v12, 0.0 }
 0x1c1   : > { %v1931_v17 = vpop.f32.mrf.mxu1  ;;  %1951 = vmatprep.mubr.msk.f32.mxu0 %vm683_vm9, %v664_v15  ;;  %vm928_vm13 = vcmask 1042434  }
 0x1c2   : > { %vm649_vm15 = vcmp.ge.f32.partialorder %v627_v14, 0.0  ;;  %v658_v19 = vmul.f32 %v653_v62, %v627_v14  ;;  %v642_v20 = vadd.f32 %v1931_v17, %v1808_v59  ;;  %1952 = vmatmul.mubr.msk.f32.gmra.mxu0 %vm683_vm9, %v665_v18  ;;  %v667_v25 = vsel %vm650_vm14, %v632_v12, %v659_v16 }
 0x1c3   : > { %v636_v21 = vpop.f32.mrf.mxu1  ;;  %v892_v17 = vlaneseq  ;;  %vm930_vm14 = vcmask 1043459  }
 0x1c4   : > { %vm652_vm1 = vcmp.ge.f32.partialorder %v642_v20, 0.0  ;;  %v661_v22 = vmul.f32 %v653_v62, %v642_v20  ;;  %v637_v23 = vadd.f32 %v1808_v59, %v636_v21  ;;  %v666_v24 = vsel %vm649_vm15, %v627_v14, %v658_v19 }
 0x1c5   : > { %1954 = vmatprep.mubr.msk.f32.mxu0 %vm683_vm9, %v666_v24  ;;  %v2382_v19 = vand.u32 127, %v892_v17  ;;  %v875_v21 = vstv %s1798_s15  ;;  %vm932_vm15 = vcmask 1044484   ;;  %s2693_s15 = scalar_lea.hbm %s2741_s8, %s1831_s27 }
 0x1c6   : > { %vm651_vm2 = vcmp.ge.f32.partialorder %v637_v23, 0.0  ;;  %v660_v26 = vmul.f32 %v653_v62, %v637_v23  ;;  %1955 = vmatmul.mubr.msk.f32.gmra.mxu0 %vm683_vm9, %v667_v25  ;;  %v669_v27 = vsel %vm652_vm1, %v642_v20, %v661_v22  ;;  %v2384_v20 = vshrl.u32 %v892_v17, 7 }
 0x1c7   : > { %1961 = vmatpush3.msra.mxu1 %v669_v27  ;;  %vm934_vm1 = vcmask 1045509  }
 0x1c8   : > { %1962 = vmatprep.subr.mxu1 %v2170_v58  ;;  %v668_v28 = vsel %vm651_vm2, %v637_v23, %v660_v26  ;;  %vm936_vm2 = vcmask 1046534  }
 0x1c9   : > { %1957 = vmatprep.mubr.msk.f32.mxu0 %vm683_vm9, %v668_v28  ;;  %1963 = vmatpush3.msra.mxu1 %v668_v28 }
 0x1ca   : > { %1958 = vmatmul.mubr.msk.f32.gmra.mxu0 %vm683_vm9, %v669_v27  ;;  %1964 = vmatprep.subr.mxu1 %v2170_v58 }
 0x1cb   : > { %1965 = vmatpush3.msra.mxu1 %v667_v25  ;;  %v2388_v25 = vsub.s32 %v2382_v19, %v2384_v20 }
 0x1cc   : > { %1966 = vmatprep.subr.mxu1 %v2170_v58 }
 0x1cd   : > { %1967 = vmatpush3.msra.mxu1 %v666_v24 }
 0x1ce   : > { %1968 = vmatprep.subr.mxu1 %v2170_v58 }
 0x1cf   : > { %1969 = vmatpush3.msra.mxu1 %v665_v18 }
 0x1d0   : > { %1970 = vmatprep.subr.mxu1 %v2170_v58 }
 0x1d1   : > { %1971 = vmatpush3.msra.mxu1 %v664_v15 }
 0x1d2   : > { %1972 = vmatprep.subr.mxu1 %v2170_v58 }
 0x1d3   : > { %1973 = vmatpush3.msra.mxu1 %v663_v8 }
 0x1d4   : > { %1974 = vmatprep.subr.mxu1 %v2170_v58 }
 0x1d5   : > { %1975 = vmatpush3.msra.mxu1 %v662_v7 }
 0x27e   : > { %v1950_v30 = vpop.f32.mrf.mxu0 }
 0x27f   : > { %v780_v32 = vadd.f32 %v1950_v30, %v1817_v29 }
 0x280   : > { %v774_v33 = vpop.f32.mrf.mxu0 }
 0x281   : > { %v823_v34 = vmul.f32 %v821_v31, %v780_v32  ;;  %v775_v35 = vadd.f32 %v1817_v29, %v774_v33  ;;  %vm814_vm3 = vcmp.ge.f32.partialorder %v780_v32, 0.0 }
 0x282   : > { %v1953_v37 = vpop.f32.mrf.mxu0 }
 0x283   : > { %vm813_vm4 = vcmp.ge.f32.partialorder %v775_v35, 0.0  ;;  %v822_v38 = vmul.f32 %v821_v31, %v775_v35  ;;  %v790_v39 = vadd.f32 %v1953_v37, %v1817_v29  ;;  %v831_v40 = vsel %vm814_vm3, %v780_v32, %v823_v34 }
 0x284   : > { %v784_v41 = vpop.f32.mrf.mxu0  ;;  %v844_v42 = vmul.f32 %v1826_v36, %v831_v40  ;;  %vm938_vm3 = vcmask 1047559  }
 0x285   : > { %v825_v43 = vmul.f32 %v821_v31, %v790_v39  ;;  %v785_v44 = vadd.f32 %v1817_v29, %v784_v41  ;;  %vm816_vm5 = vcmp.ge.f32.partialorder %v790_v39, 0.0  ;;  %v830_v45 = vsel %vm813_vm4, %v775_v35, %v822_v38 }
 0x286   : > { %v1956_v46 = vpop.f32.mrf.mxu0  ;;  %v854_v47 = vsel %vm352_vm0, %v844_v42, 0.0  ;;  %v843_v48 = vmul.f32 %v1826_v36, %v830_v45  ;;  %vm941_vm4 = vcmask 64512  }
 0x287   : > { %vm815_vm6 = vcmp.ge.f32.partialorder %v785_v44, 0.0  ;;  %v824_v49 = vmul.f32 %v821_v31, %v785_v44  ;;  %v800_v50 = vadd.f32 %v1956_v46, %v1817_v29  ;;  %855 = vadd.xlane.f32.xlu0 %v854_v47  ;;  %v833_v51 = vsel %vm816_vm5, %v790_v39, %v825_v43 }
 0x288   : > { %v794_v52 = vpop.f32.mrf.mxu0  ;;  %v846_v53 = vmul.f32 %v1826_v36, %v833_v51  ;;  %v851_v60 = vsel %vm352_vm0, %v843_v48, 0.0  ;;  %vm2172_vm5 = vmmov 0  }
 0x289   : > { %vm818_vm7 = vcmp.ge.f32.partialorder %v800_v50, 0.0  ;;  %v827_v54 = vmul.f32 %v821_v31, %v800_v50  ;;  %v795_v55 = vadd.f32 %v1817_v29, %v794_v52  ;;  %v832_v56 = vsel %vm815_vm6, %v785_v44, %v824_v49  ;;  %1976 = vmatprep.mubr.msk.f32.mxu1 %vm2172_vm5, %v2170_v58  ;;  %1995 = vmatprep.mubr.msk.f32.mxu0 %vm2172_vm5, %v2170_v58 }
 0x28a   : > { %v1959_v57 = vpop.f32.mrf.mxu0  ;;  %v860_v59 = vsel %vm352_vm0, %v846_v53, 0.0  ;;  %v845_v61 = vmul.f32 %v1826_v36, %v832_v56  ;;  %v952_v56 = vsub.s32 1, %v2384_v20  ;;  %vm1497_vm6 = vcmask 130048  }
 0x28b   : > { %vm817_vm8 = vcmp.ge.f32.partialorder %v795_v55, 0.0  ;;  %v826_v62 = vmul.f32 %v821_v31, %v795_v55  ;;  %v810_v63 = vadd.f32 %v1959_v57, %v1817_v29  ;;  %861 = vadd.xlane.f32.xlu1 %v860_v59  ;;  %852 = vadd.xlane.f32.xlu0 %v851_v60  ;;  %v835_v0 = vsel %vm818_vm7, %v800_v50, %v827_v54 }
 0x28c   : > { %v804_v1 = vpop.f32.mrf.mxu0  ;;  %v857_v5 = vsel %vm352_vm0, %v845_v61, 0.0  ;;  %v848_v7 = vmul.f32 %v1826_v36, %v835_v0  ;;  %v2171_v54 = vmov 0   ;;  %v956_v57 = vsub.s32 2, %v2384_v20 }
 0x28d   : > { %vm820_vm10 = vcmp.ge.f32.partialorder %v810_v63, 0.0  ;;  %v829_v2 = vmul.f32 %v821_v31, %v810_v63  ;;  %v805_v3 = vadd.f32 %v1817_v29, %v804_v1  ;;  %v834_v4 = vsel %vm817_vm8, %v795_v55, %v826_v62  ;;  %2058 = vset.pattern.permute.xlu0 %v2171_v54  ;;  %2057 = vset.pattern.permute.xlu1 %v2171_v54 }
 0x28e   : > { %v847_v6 = vmul.f32 %v1826_v36, %v834_v4  ;;  %v866_v12 = vsel %vm352_vm0, %v848_v7, 0.0  ;;  %v948_v55 = vsub.s32 0, %v2384_v20  ;;  %v960_v59 = vsub.s32 3, %v2384_v20 }
 0x28f   : > { %vm819_vm11 = vcmp.ge.f32.partialorder %v805_v3, 0.0  ;;  %v828_v8 = vmul.f32 %v821_v31, %v805_v3  ;;  %858 = vadd.xlane.f32.xlu1 %v857_v5  ;;  %v837_v9 = vsel %vm820_vm10, %v810_v63, %v829_v2  ;;  %v964_v0 = vsub.s32 4, %v2384_v20 }
 0x290   : > { %v863_v10 = vsel %vm352_vm0, %v847_v6, 0.0  ;;  %v850_v14 = vmul.f32 %v1826_v36, %v837_v9  ;;  %v968_v7 = vsub.s32 5, %v2384_v20  ;;  %vm1499_vm7 = vcmask 195584  }
 0x291   : > { %864 = vadd.xlane.f32.xlu0 %v863_v10  ;;  %v836_v11 = vsel %vm819_vm11, %v805_v3, %v828_v8  ;;  %vm1502_vm8 = vcmask 326656  }
 0x292   : > { %v849_v13 = vmul.f32 %v1826_v36, %v836_v11  ;;  %v872_v16 = vsel %vm352_vm0, %v850_v14, 0.0  ;;  %v972_v11 = vsub.s32 6, %v2384_v20 }
 0x293   : > { %867 = vadd.xlane.f32.xlu1 %v866_v12 }
 0x294   : > { %v869_v15 = vsel %vm352_vm0, %v849_v13, 0.0 }
 0x295   : > { %870 = vadd.xlane.f32.xlu0 %v869_v15  ;;  %v976_v15 = vsub.s32 7, %v2384_v20 }
 0x297   : > { %873 = vadd.xlane.f32.xlu1 %v872_v16 }
 0x310   : > { %v856_v18 = vpop.xlane.xlu0 %855 }
 0x311   : > { %v877_v26 = vadd.f32 %v875_v21, %v856_v18 }
 0x313   : > { %v901_v31 = vrot.slane %v877_v26, %v2388_v25 }
 0x314   : > { %v862_v22 = vpop.xlane.xlu1 %861  ;;  %v853_v23 = vpop.xlane.xlu0 %852 }
 0x315   : > { %v876_v24 = vadd.f32 %v875_v21, %v853_v23  ;;  %v2390_v27 = vadd.f32 %v875_v21, %v862_v22 }
 0x317   : > { %v897_v28 = vrot.slane %v876_v24, %v2388_v25  ;;  %v909_v35 = vrot.slane %v2390_v27, %v2388_v25 }
 0x318   : > { %v859_v29 = vpop.xlane.xlu1 %858 }
 0x319   : > { %v878_v30 = vadd.f32 %v875_v21, %v859_v29  ;;  %v927_v36 = vsel %vm926_vm12, %v901_v31, %v897_v28 }
 0x31a   : > { %v865_v32 = vpop.xlane.xlu0 %864 }
 0x31b   : > { %v905_v33 = vrot.slane %v878_v30, %v2388_v25  ;;  %v880_v34 = vadd.f32 %v875_v21, %v865_v32 }
 0x31c   : > { %v868_v37 = vpop.xlane.xlu1 %867 }
 0x31d   : > { %v929_v38 = vsel %vm928_vm13, %v905_v33, %v927_v36  ;;  %v913_v39 = vrot.slane %v880_v34, %v2388_v25  ;;  %v881_v40 = vadd.f32 %v875_v21, %v868_v37 }
 0x31e   : > { %v931_v41 = vsel %vm930_vm14, %v909_v35, %v929_v38  ;;  %v871_v42 = vpop.xlane.xlu0 %870 }
 0x31f   : > { %v933_v43 = vsel %vm932_vm15, %v913_v39, %v931_v41  ;;  %v917_v44 = vrot.slane %v881_v40, %v2388_v25  ;;  %v882_v45 = vadd.f32 %v875_v21, %v871_v42 }
 0x320   : > { %v874_v46 = vpop.xlane.xlu1 %873 }
 0x321   : > { %v921_v47 = vrot.slane %v882_v45, %v2388_v25  ;;  %v883_v48 = vadd.f32 %v875_v21, %v874_v46  ;;  %v935_v49 = vsel %vm934_vm1, %v917_v44, %v933_v43 }
 0x323   : > { %v925_v50 = vrot.slane %v883_v48, %v2388_v25  ;;  %v937_v51 = vsel %vm936_vm2, %v921_v47, %v935_v49 }
 0x325   : > { %v939_v52 = vsel %vm938_vm3, %v925_v50, %v937_v51 }
 0x326   : > { %v942_v53 = vsel %vm941_vm4, %v939_v52, -inf }
 0x327   : > { %943 = vmax.xlane.f32.xlu0 %v942_v53 }
 0x3b0   : > { %v944_v60 = vpop.xlane.xlu0 %943 }
 0x3b1   : > { %v949_v61 = vrot.slane %v944_v60, %v948_v55  ;;  %v953_v62 = vrot.slane %v944_v60, %v952_v56  ;;  %v957_v63 = vrot.slane %v944_v60, %v956_v57  ;;  %v961_v1 = vrot.slane %v944_v60, %v960_v59 }
 0x3b2   : > { %v965_v8 = vrot.slane %v944_v60, %v964_v0  ;;  %v969_v12 = vrot.slane %v944_v60, %v968_v7  ;;  %v973_v16 = vrot.slane %v944_v60, %v972_v11  ;;  %v977_v21 = vrot.slane %v944_v60, %v976_v15 }
 0x3b3   : > { %v986_v2 = vsub.f32 %v876_v24, %v949_v61  ;;  %v987_v3 = vsub.f32 %v877_v26, %v953_v62  ;;  %v988_v4 = vsub.f32 %v878_v30, %v957_v63  ;;  %v989_v9 = vsub.f32 %v2390_v27, %v961_v1 }
 0x3b4   : > { %v990_v13 = vsub.f32 %v880_v34, %v965_v8  ;;  %v991_v17 = vsub.f32 %v881_v40, %v969_v12  ;;  %v992_v22 = vsub.f32 %v882_v45, %v973_v16  ;;  %v993_v27 = vsub.f32 %v883_v48, %v977_v21  ;;  %v1590_v21 = vld [vmem:[%s2738_s5 + $0x18] sm:$0xff] }
 0x3b5   : > { %v994_v5 = vmul.f32 1.442695, %v986_v2  ;;  %v996_v6 = vmul.f32 1.442695, %v987_v3  ;;  %v998_v10 = vmul.f32 1.442695, %v988_v4 }
 0x3b6   : > { %v1000_v14 = vmul.f32 1.442695, %v989_v9  ;;  %v1002_v18 = vmul.f32 1.442695, %v990_v13  ;;  %v1004_v23 = vmul.f32 1.442695, %v991_v17 }
 0x3b7   : > { %2059 = vpow2.f32 %v994_v5  ;;  %v1006_v28 = vmul.f32 1.442695, %v992_v22  ;;  %v1008_v30 = vmul.f32 1.442695, %v993_v27  ;;  %v1589_v22 = vld [vmem:[%s2738_s5 + $0x10] sm:$0xff]  ;;  %v1250_v27 = vadd.s32 4294967280, %v2382_v19 }
 0x3b8   : > { %2061 = vpow2.f32 %v996_v6 }
 0x3b9   : > { %2063 = vpow2.f32 %v998_v10 }
 0x3ba   : > { %2065 = vpow2.f32 %v1000_v14 }
 0x3bb   : > { %2067 = vpow2.f32 %v1002_v18 }
 0x3bc   : > { %2069 = vpow2.f32 %v1004_v23  ;;  %v1588_v23 = vld [vmem:[%s2738_s5 + $0x8] sm:$0xff] }
 0x3bd   : > { %2071 = vpow2.f32 %v1006_v28  ;;  %v1291_v28 = vadd.s32 4294967272, %v2382_v19 }
 0x3be   : > { %2073 = vpow2.f32 %v1008_v30  ;;  %v1373_v30 = vadd.s32 4294967256, %v2382_v19 }
 0x3c4   : > { %v2060_v24 = vpop.eup %2059 }
 0x3c5   : > { %v2062_v26 = vpop.eup %2061  ;;  %1019 = vperm.xlu1 %2057, %v2060_v24  }
 0x3c6   : > { %1022 = vperm.xlu0 %2058, %v2062_v26   ;;  %v2064_v29 = vpop.eup %2063 }
 0x3c7   : > { %v2066_v31 = vpop.eup %2065 }
 0x3c8   : > { %v2068_v32 = vpop.eup %2067 }
 0x3c9   : > { %1025 = vperm.xlu1 %2057, %v2064_v29   ;;  %v2070_v33 = vpop.eup %2069 }
 0x3ca   : > { %v2072_v34 = vpop.eup %2071 }
 0x3cb   : > { %v2074_v35 = vpop.eup %2073 }
 0x3cd   : > { %1028 = vperm.xlu1 %2057, %v2066_v31  }
 0x3d1   : > { %1031 = vperm.xlu1 %2057, %v2068_v32  }
 0x3d5   : > { %1034 = vperm.xlu1 %2057, %v2070_v33  }
 0x3d9   : > { %1037 = vperm.xlu1 %2057, %v2072_v34  }
 0x3dd   : > { %1040 = vperm.xlu1 %2057, %v2074_v35  }
 0x440   : > { %v1020_v36 = vpop.permute.xlu1 %1019 }
 0x441   : > { %v1023_v40 = vpop.permute.xlu0 %1022  ;;  %v1045_v43 = vrot.slane %v1020_v36, %v2388_v25  ;;  %v2514_v36 = vsub.s32 %v1291_v28, %v2384_v20 }
 0x442   : > { %v1049_v42 = vrot.slane %v1023_v40, %v2388_v25 }
 0x444   : > { %v1026_v37 = vpop.permute.xlu1 %1025  ;;  %v1074_v48 = vsel %vm926_vm12, %v1049_v42, %v1045_v43 }
 0x445   : > { %v1053_v44 = vrot.slane %v1026_v37, %v2388_v25 }
 0x447   : > { %v1075_v50 = vsel %vm928_vm13, %v1053_v44, %v1074_v48 }
 0x448   : > { %v1029_v38 = vpop.permute.xlu1 %1028 }
 0x449   : > { %v1057_v45 = vrot.slane %v1029_v38, %v2388_v25  ;;  %v2520_v38 = vsub.s32 %v1373_v30, %v2384_v20 }
 0x44b   : > { %v1076_v52 = vsel %vm930_vm14, %v1057_v45, %v1075_v50 }
 0x44c   : > { %v1032_v39 = vpop.permute.xlu1 %1031 }
 0x44d   : > { %v1061_v46 = vrot.slane %v1032_v39, %v2388_v25 }
 0x44f   : > { %v1077_v53 = vsel %vm932_vm15, %v1061_v46, %v1076_v52 }
 0x450   : > { %v1035_v41 = vpop.permute.xlu1 %1034 }
 0x451   : > { %v1065_v49 = vrot.slane %v1035_v41, %v2388_v25 }
 0x453   : > { %v1078_v60 = vsel %vm934_vm1, %v1065_v49, %v1077_v53 }
 0x454   : > { %v1038_v47 = vpop.permute.xlu1 %1037 }
 0x455   : > { %v1069_v51 = vrot.slane %v1038_v47, %v2388_v25 }
 0x457   : > { %v1079_v62 = vsel %vm936_vm2, %v1069_v51, %v1078_v60 }
 0x458   : > { %v1041_v54 = vpop.permute.xlu1 %1040 }
 0x459   : > { %v1073_v61 = vrot.slane %v1041_v54, %v2388_v25 }
 0x45b   : > { %v1080_v63 = vsel %vm938_vm3, %v1073_v61, %v1079_v62 }
 0x45c   : > { %v1082_v1 = vsel %vm941_vm4, %v1080_v63, 0.0 }
 0x45d   : > { %1083 = vadd.xlane.f32.xlu1 %v1082_v1 }
 0x4e6   : > { %v1084_v2 = vpop.xlane.xlu1 %1083 }
 0x4e7   : > { %2075 = vrcp.f32 %v1084_v2 }
 0x4f4   : > { %v2076_v3 = vpop.eup %2075 }
 0x4f5   : > { %v1090_v4 = vrot.slane %v2076_v3, %v948_v55  ;;  %v1094_v6 = vrot.slane %v2076_v3, %v952_v56  ;;  %v1098_v9 = vrot.slane %v2076_v3, %v956_v57  ;;  %v1102_v12 = vrot.slane %v2076_v3, %v960_v59 }
 0x4f6   : > { %v1106_v14 = vrot.slane %v2076_v3, %v964_v0  ;;  %v1110_v56 = vrot.slane %v2076_v3, %v968_v7  ;;  %v1114_v57 = vrot.slane %v2076_v3, %v972_v11  ;;  %v1118_v59 = vrot.slane %v2076_v3, %v976_v15  ;;  %v1594_v0 = vld [vmem:[%s2738_s5 + $0x38] sm:$0xff]  ;;  %v1593_v7 = vld [vmem:[%s2738_s5 + $0x30] sm:$0xff]  ;;  %v1592_v11 = vld [vmem:[%s2738_s5 + $0x28] sm:$0xff] }
 0x4f7   : > { %v1127_v5 = vmul.f32 %v2060_v24, %v1090_v4  ;;  %v1128_v8 = vmul.f32 %v2062_v26, %v1094_v6  ;;  %v1129_v10 = vmul.f32 %v2064_v29, %v1098_v9  ;;  %v1130_v13 = vmul.f32 %v2066_v31, %v1102_v12  ;;  %1980 = vmatpush3.msra.mxu0 %v1594_v0  ;;  %v1591_v15 = vld [vmem:[%s2738_s5 + $0x20] sm:$0xff] }
 0x4f8   : > { %v1131_v55 = vmul.f32 %v2068_v32, %v1106_v14  ;;  %v1132_v16 = vmul.f32 %v2070_v33, %v1110_v56  ;;  %v1133_v17 = vmul.f32 %v2072_v34, %v1114_v57  ;;  %v1134_v18 = vmul.f32 %v2074_v35, %v1118_v59  ;;  %1981 = vmatprep.subr.mxu0 %v2170_v58  ;;  %v1587_v24 = vld [vmem:[%s2738_s5] sm:$0xff] }
 0x4f9   : > { %1146 = vperm.xlu0 %2058, %v1127_v5   ;;  %1982 = vmatpush3.msra.mxu0 %v1593_v7  ;;  %v1209_v26 = vadd.s32 4294967288, %v2382_v19  ;;  %v1332_v29 = vadd.s32 4294967264, %v2382_v19  ;;  %v1414_v31 = vadd.s32 4294967248, %v2382_v19  ;;  %v1455_v33 = vadd.s32 4294967240, %v2382_v19 }
 0x4fa   : > { %1983 = vmatprep.subr.mxu0 %v2170_v58  ;;  %v1508_v34 = vmul.u32 8, %v2384_v20  ;;  %v2511_v35 = vsub.s32 %v1250_v27, %v2384_v20 }
 0x4fb   : > { %1984 = vmatpush3.msra.mxu0 %v1592_v11  ;;  %v2517_v37 = vsub.s32 %v1332_v29, %v2384_v20  ;;  %v2523_v39 = vsub.s32 %v1414_v31, %v2384_v20  ;;  %v2526_v41 = vsub.s32 %v1455_v33, %v2384_v20 }
 0x4fc   : > { %1985 = vmatprep.subr.mxu0 %v2170_v58  ;;  %v2531_v43 = vadd.s32 8, %v1508_v34  ;;  %vm2626_vm10 = vcmp.ge.s32.totalorder %v2382_v19, %v1508_v34 }
 0x4fd   : > { %1149 = vperm.xlu0 %2058, %v1128_v8   ;;  %1986 = vmatpush3.msra.mxu0 %v1591_v15 }
 0x4fe   : > { %1987 = vmatprep.subr.mxu0 %v2170_v58  ;;  %vm1511_vm11 = vcmp.lt.s32.totalorder %v2382_v19, %v2531_v43  ;;  %v1828_v19 = vld [vmem:[%s2739_s6] ss:$0 sm:$0xff] }
 0x4ff   : > { %1988 = vmatpush3.msra.mxu0 %v1590_v21 }
 0x500   : > { %1989 = vmatprep.subr.mxu0 %v2170_v58 }
 0x501   : > { %1152 = vperm.xlu0 %2058, %v1129_v10   ;;  %1990 = vmatpush3.msra.mxu0 %v1589_v22 }
 0x502   : > { %1991 = vmatprep.subr.mxu0 %v2170_v58 }
 0x503   : > { %1992 = vmatpush3.msra.mxu0 %v1588_v23 }
 0x504   : > { %1993 = vmatprep.subr.mxu0 %v2170_v58  ;;  %v2508_v58 = vsub.s32 %v1209_v26, %v2384_v20 }
 0x505   : > { %1155 = vperm.xlu0 %2058, %v1130_v13   ;;  %1994 = vmatpush3.msra.mxu0 %v1587_v24 }
 0x509   : > { %1158 = vperm.xlu0 %2058, %v1131_v55  }
 0x50d   : > { %1161 = vperm.xlu0 %2058, %v1132_v16  }
 0x511   : > { %1164 = vperm.xlu0 %2058, %v1133_v17  }
 0x515   : > { %1167 = vperm.xlu0 %2058, %v1134_v18  }
 0x574   : > { %v1147_v32 = vpop.permute.xlu0 %1146 }
 0x575   : > { %v1172_v44 = vrot.slane %v1147_v32, %v2388_v25  ;;  %v1213_v45 = vrot.slane %v1147_v32, %v2508_v58  ;;  %v1254_v46 = vrot.slane %v1147_v32, %v2511_v35  ;;  %v1295_v52 = vrot.slane %v1147_v32, %v2514_v36 }
 0x576   : > { %v1336_v53 = vrot.slane %v1147_v32, %v2517_v37  ;;  %v1377_v54 = vrot.slane %v1147_v32, %v2520_v38  ;;  %v1418_v60 = vrot.slane %v1147_v32, %v2523_v39  ;;  %v1459_v62 = vrot.slane %v1147_v32, %v2526_v41 }
 0x578   : > { %v1150_v40 = vpop.permute.xlu0 %1149 }
 0x579   : > { %v1176_v42 = vrot.slane %v1150_v40, %v2388_v25  ;;  %v1217_v47 = vrot.slane %v1150_v40, %v2508_v58  ;;  %v1258_v48 = vrot.slane %v1150_v40, %v2511_v35  ;;  %v1299_v49 = vrot.slane %v1150_v40, %v2514_v36 }
 0x57a   : > { %v1340_v50 = vrot.slane %v1150_v40, %v2517_v37  ;;  %v1381_v51 = vrot.slane %v1150_v40, %v2520_v38  ;;  %v1422_v1 = vrot.slane %v1150_v40, %v2523_v39  ;;  %v1463_v2 = vrot.slane %v1150_v40, %v2526_v41 }
 0x57b   : > { %v1201_v63 = vsel %vm926_vm12, %v1176_v42, %v1172_v44  ;;  %v1242_v3 = vsel %vm926_vm12, %v1217_v47, %v1213_v45  ;;  %v1283_v8 = vsel %vm926_vm12, %v1258_v48, %v1254_v46  ;;  %v1324_v9 = vsel %vm926_vm12, %v1299_v49, %v1295_v52 }
 0x57c   : > { %v1153_v61 = vpop.permute.xlu0 %1152  ;;  %v1365_v10 = vsel %vm926_vm12, %v1340_v50, %v1336_v53  ;;  %v1406_v12 = vsel %vm926_vm12, %v1381_v51, %v1377_v54  ;;  %v1447_v57 = vsel %vm926_vm12, %v1422_v1, %v1418_v60  ;;  %v1488_v17 = vsel %vm926_vm12, %v1463_v2, %v1459_v62 }
 0x57d   : > { %v1180_v4 = vrot.slane %v1153_v61, %v2388_v25  ;;  %v1221_v5 = vrot.slane %v1153_v61, %v2508_v58  ;;  %v1262_v6 = vrot.slane %v1153_v61, %v2511_v35  ;;  %v1303_v13 = vrot.slane %v1153_v61, %v2514_v36 }
 0x57e   : > { %v1344_v14 = vrot.slane %v1153_v61, %v2517_v37  ;;  %v1385_v55 = vrot.slane %v1153_v61, %v2520_v38  ;;  %v1426_v56 = vrot.slane %v1153_v61, %v2523_v39  ;;  %v1467_v59 = vrot.slane %v1153_v61, %v2526_v41 }
 0x57f   : > { %v1202_v0 = vsel %vm928_vm13, %v1180_v4, %v1201_v63  ;;  %v1243_v7 = vsel %vm928_vm13, %v1221_v5, %v1242_v3  ;;  %v1284_v11 = vsel %vm928_vm13, %v1262_v6, %v1283_v8  ;;  %v1325_v26 = vsel %vm928_vm13, %v1303_v13, %v1324_v9 }
 0x580   : > { %v1156_v16 = vpop.permute.xlu0 %1155  ;;  %v1366_v27 = vsel %vm928_vm13, %v1344_v14, %v1365_v10  ;;  %v1407_v28 = vsel %vm928_vm13, %v1385_v55, %v1406_v12  ;;  %v1448_v29 = vsel %vm928_vm13, %v1426_v56, %v1447_v57  ;;  %v1489_v40 = vsel %vm928_vm13, %v1467_v59, %v1488_v17 }
 0x581   : > { %v1184_v18 = vrot.slane %v1156_v16, %v2388_v25  ;;  %v1225_v15 = vrot.slane %v1156_v16, %v2508_v58  ;;  %v1266_v21 = vrot.slane %v1156_v16, %v2511_v35  ;;  %v1307_v22 = vrot.slane %v1156_v16, %v2514_v36 }
 0x582   : > { %v1348_v23 = vrot.slane %v1156_v16, %v2517_v37  ;;  %v1389_v24 = vrot.slane %v1156_v16, %v2520_v38  ;;  %v1430_v32 = vrot.slane %v1156_v16, %v2523_v39  ;;  %v1471_v33 = vrot.slane %v1156_v16, %v2526_v41 }
 0x583   : > { %v1203_v31 = vsel %vm930_vm14, %v1184_v18, %v1202_v0  ;;  %v1244_v42 = vsel %vm930_vm14, %v1225_v15, %v1243_v7  ;;  %v1285_v47 = vsel %vm930_vm14, %v1266_v21, %v1284_v11  ;;  %v1326_v48 = vsel %vm930_vm14, %v1307_v22, %v1325_v26 }
 0x584   : > { %v1159_v30 = vpop.permute.xlu0 %1158  ;;  %v1367_v49 = vsel %vm930_vm14, %v1348_v23, %v1366_v27  ;;  %v1408_v50 = vsel %vm930_vm14, %v1389_v24, %v1407_v28  ;;  %v1449_v63 = vsel %vm930_vm14, %v1430_v32, %v1448_v29  ;;  %v1490_v1 = vsel %vm930_vm14, %v1471_v33, %v1489_v40  ;;  %vm1512_vm14 = vmand %vm2626_vm10, %vm1511_vm11 }
 0x585   : > { %v1188_v44 = vrot.slane %v1159_v30, %v2388_v25  ;;  %v1229_v45 = vrot.slane %v1159_v30, %v2508_v58  ;;  %v1270_v46 = vrot.slane %v1159_v30, %v2511_v35  ;;  %v1311_v51 = vrot.slane %v1159_v30, %v2514_v36 }
 0x586   : > { %v1352_v52 = vrot.slane %v1159_v30, %v2517_v37  ;;  %v1393_v53 = vrot.slane %v1159_v30, %v2520_v38  ;;  %v1434_v54 = vrot.slane %v1159_v30, %v2523_v39  ;;  %v1475_v61 = vrot.slane %v1159_v30, %v2526_v41 }
 0x587   : > { %v1204_v2 = vsel %vm932_vm15, %v1188_v44, %v1203_v31  ;;  %v1245_v3 = vsel %vm932_vm15, %v1229_v45, %v1244_v42  ;;  %v1286_v4 = vsel %vm932_vm15, %v1270_v46, %v1285_v47  ;;  %v1327_v12 = vsel %vm932_vm15, %v1311_v51, %v1326_v48 }
 0x588   : > { %v2593_v60 = vpop.permute.xlu0 %1161  ;;  %v1368_v13 = vsel %vm932_vm15, %v1352_v52, %v1367_v49  ;;  %v1409_v55 = vsel %vm932_vm15, %v1393_v53, %v1408_v50  ;;  %v1450_v56 = vsel %vm932_vm15, %v1434_v54, %v1449_v63  ;;  %v1491_v59 = vsel %vm932_vm15, %v1475_v61, %v1490_v1 }
 0x589   : > { %v1192_v62 = vrot.slane %v2593_v60, %v2388_v25  ;;  %v1233_v5 = vrot.slane %v2593_v60, %v2508_v58  ;;  %v1274_v6 = vrot.slane %v2593_v60, %v2511_v35  ;;  %v1315_v8 = vrot.slane %v2593_v60, %v2514_v36 }
 0x58a   : > { %v1356_v9 = vrot.slane %v2593_v60, %v2517_v37  ;;  %v1397_v10 = vrot.slane %v2593_v60, %v2520_v38  ;;  %v1438_v57 = vrot.slane %v2593_v60, %v2523_v39  ;;  %v1479_v17 = vrot.slane %v2593_v60, %v2526_v41 }
 0x58b   : > { %v1205_v16 = vsel %vm934_vm1, %v1192_v62, %v1204_v2  ;;  %v1246_v0 = vsel %vm934_vm1, %v1233_v5, %v1245_v3  ;;  %vm1504_vm12 = vcmask 392192   ;;  %v1287_v21 = vsel %vm934_vm1, %v1274_v6, %v1286_v4 }
 0x58c   : > { %v1165_v14 = vpop.permute.xlu0 %1164  ;;  %v1328_v20 = vsel %vm934_vm1, %v1315_v8, %v1327_v12  ;;  %v1369_v34 = vsel %vm934_vm1, %v1356_v9, %v1368_v13  ;;  %v1410_v22 = vsel %vm934_vm1, %v1397_v10, %v1409_v55  ;;  %vm1506_vm13 = vcmask 457728  }
 0x58d   : > { %v1196_v7 = vrot.slane %v1165_v14, %v2388_v25  ;;  %v1237_v11 = vrot.slane %v1165_v14, %v2508_v58  ;;  %v1278_v15 = vrot.slane %v1165_v14, %v2511_v35  ;;  %v1319_v23 = vrot.slane %v1165_v14, %v2514_v36 }
 0x58e   : > { %v1360_v24 = vrot.slane %v1165_v14, %v2517_v37  ;;  %v1401_v26 = vrot.slane %v1165_v14, %v2520_v38  ;;  %v1442_v27 = vrot.slane %v1165_v14, %v2523_v39  ;;  %v1483_v48 = vrot.slane %v1165_v14, %v2526_v41 }
 0x58f   : > { %v1206_v33 = vsel %vm936_vm2, %v1196_v7, %v1205_v16  ;;  %v1247_v40 = vsel %vm936_vm2, %v1237_v11, %v1246_v0  ;;  %v1288_v42 = vsel %vm936_vm2, %v1278_v15, %v1287_v21  ;;  %v1451_v53 = vsel %vm934_vm1, %v1438_v57, %v1450_v56 }
 0x590   : > { %v1168_v28 = vpop.permute.xlu0 %1167  ;;  %v1370_v50 = vsel %vm936_vm2, %v1360_v24, %v1369_v34  ;;  %v1452_v60 = vsel %vm936_vm2, %v1442_v27, %v1451_v53  ;;  %v1492_v61 = vsel %vm934_vm1, %v1479_v17, %v1491_v59 }
 0x591   : > { %v1200_v29 = vrot.slane %v1168_v28, %v2388_v25  ;;  %v1241_v30 = vrot.slane %v1168_v28, %v2508_v58  ;;  %v1282_v31 = vrot.slane %v1168_v28, %v2511_v35  ;;  %v1323_v32 = vrot.slane %v1168_v28, %v2514_v36 }
 0x592   : > { %v1364_v44 = vrot.slane %v1168_v28, %v2517_v37  ;;  %v1405_v58 = vrot.slane %v1168_v28, %v2520_v38  ;;  %v1329_v35 = vsel %vm936_vm2, %v1319_v23, %v1328_v20  ;;  %v1446_v36 = vrot.slane %v1168_v28, %v2523_v39 }
 0x593   : > { %v1207_v45 = vsel %vm938_vm3, %v1200_v29, %v1206_v33  ;;  %v1248_v46 = vsel %vm938_vm3, %v1241_v30, %v1247_v40  ;;  %v1289_v25 = vsel %vm938_vm3, %v1282_v31, %v1288_v42  ;;  %v1330_v49 = vsel %vm938_vm3, %v1323_v32, %v1329_v35 }
 0x594   : > { %v1496_v47 = vsel %vm941_vm4, %v1207_v45, %v1248_v46  ;;  %v1487_v37 = vrot.slane %v1168_v28, %v2526_v41  ;;  %v1371_v52 = vsel %vm938_vm3, %v1364_v44, %v1370_v50  ;;  %v1411_v38 = vsel %vm936_vm2, %v1401_v26, %v1410_v22 }
 0x595   : > { %v1498_v51 = vsel %vm1497_vm6, %v1496_v47, %v1289_v25  ;;  %v1412_v54 = vsel %vm938_vm3, %v1405_v58, %v1411_v38  ;;  %v1453_v62 = vsel %vm938_vm3, %v1446_v36, %v1452_v60  ;;  %v1493_v63 = vsel %vm936_vm2, %v1483_v48, %v1492_v61 }
 0x596   : > { %v1500_v39 = vsel %vm1499_vm7, %v1498_v51, %v1330_v49  ;;  %v1494_v2 = vsel %vm938_vm3, %v1487_v37, %v1493_v63 }
 0x597   : > { %v1501_v41 = vsel %vm352_vm0, %v1500_v39, %v1371_v52 }
 0x598   : > { %v1503_v1 = vsel %vm1502_vm8, %v1501_v41, %v1412_v54 }
 0x599   : > { %v1505_v3 = vsel %vm1504_vm12, %v1503_v1, %v1453_v62 }
 0x59a   : > { %v1507_v4 = vsel %vm1506_vm13, %v1505_v3, %v1494_v2 }
 0x59b   : > { %v1513_v5 = vsel %vm1512_vm14, %v1507_v4, 0.0 }
 0x59c   : > { %1977 = vmatmul.mubr.msk.f32.vlgmr.msra.gmra.mxu1 %vm683_vm9, %v1513_v5 }
 0x65c   : > { %v1583_v6 = vpop.f32.mrf.mxu1 }
 0x65d   : > { %1996 = vmatmul.mubr.msk.f32.vlgmr.msra.gmra.mxu0 %vm683_vm9, %v1583_v6 }
 0x65e   : > { %v1978_v8 = vpop.f32.mrf.mxu1 }
 0x71d   : > { %v1671_v43 = vpop.f32.mrf.mxu0 }
 0x71e   : > { %v1672_v9 = vadd.f32 %v1828_v19, %v1671_v43 }
 0x71f   : > { %v1997_v10 = vpop.f32.mrf.mxu0 }
 0x720   : > { %1675 = vst [vmem:[%s317_s28] sm:$0xff] %v1672_v9 }
 0x721   : > { %2102 = shalt.err (!%p2099_p10)
}
 0x722   : > { %s2103_s25 = scalar_lea.hbm %s2693_s15, 128  ;;  %s2107_s27 = scalar_lea.hbm %s2741_s8, 256 }
 0x723   : > { %p2104_p11 = scmp.ne.s32.totalorder %s2693_s15, %s2103_s25  ;;  %p2108_p1 = scmp.lt.s32.totalorder %s2693_s15, %s2741_s8 }
 0x724   : > { %p2109_p2 = scmp.lt.s32.totalorder %s2107_s27, %s2103_s25 }
 0x725   : > { %p2105_p12 = pnand %p2104_p11, %p2262_p9 }
 0x726   : > { %p2110_p3 = por %p2109_p2, %p2108_p1 }
 0x727   : > { %p2106_p0 = pneg %p2105_p12 }
 0x729   : > { %p2111_p4 = pnand %p2110_p3, %p2106_p0 }
 0x72b   : > { %2114 = shalt.err (!%p2111_p4)
}
 0x72c   : > { %1998 = dma.vmem_to_hbm [thread:$0]  (%p2262_p9), %s1692_s29, 128, %s2693_s15, %s1677_s16  }
 0x72d PF: > { %p2004_p5 = scmp.ge.s32.totalorder %s2167_s14, 2  ;;  %s1703_s9 = sand.u32 1, %s2147_s10  }
 0x72e   : > { %s1704_s18 = scalar_lea.sflag [#allocation5], %s1703_s9 }
 0x72f   : > { %p2001_p6 = pnand %p2004_p5, %p2269_p13 }
 0x731   : > { %p2002_p7 = pneg %p2001_p6 }
 0x733   : > { %2142 = dma.done.wait (%p2002_p7), %s1704_s18, 128  }
 0x734   : > { %2144 = vsyncadd (%p2002_p7), %s1704_s18, 4294967168  ;;  %s27_s14 = sadd.s32 1, %s2167_s14   ;;  %s2746_s10 = smov %s2151_s11 }
 0x735   : > { %p24_p8 = scmp.ge.s32.totalorder %s27_s14, 4   ;;  %s2747_s11 = smov %s2155_s0 }
 0x736   : > { %s2748_s0 = smov %s2275_s22  ;;  %s2749_s12 = smov %s2163_s13 }
 0x737   : > { %s2750_s13 = smov %s2752_s17  ;;  %26 = sbr.rel (!%p24_p8) target bundleno = 19 (0x13), region = 89 }
 0x73c   :  { %1709 = vsyncpa [#allocation5], 1 }
 0x73d   :  { %1711 = vsyncpa [#allocation5 + $0x1], 1 }

</bundles_post_ra>
